<compile_context>
chip_gen: v5e
topology: v5e:2x2
jax: 0.10.0
libtpu: 0.0.40
codegen_flags: <defaults>
</compile_context>

<pallas_src>
import jax
import jax.numpy as jnp
from jax import lax
from jax.experimental import pallas as pl
from jax.experimental.pallas import tpu as pltpu


# ---------------------------------------------------------------------------
# Fused ConvC3 Pallas kernel (one launch for the whole block)
# ---------------------------------------------------------------------------
def _make_convc3_kernel(H, W, c2, c_):
    """Kernel factory closing over the static shapes."""

    def silu(z):
        return z * jax.nn.sigmoid(z)

    def kernel(x_ref, masks_ref,
               w_cv_ref, w_cv1_ref, w_mcv1_ref, w_mcv2_ref, w_cv2_ref,
               w_cv3_ref, b_ref, out_ref):
        # x_ref:     (c1, H*W)       channels on sublanes, spatial on lanes
        # masks_ref: (9, H*W)        per-tap 'SAME' border masks (f32 0/1)
        # w_*_ref:   (Cout, K*K*Cin) BN-folded weight matrices
        # b_ref:     (8, 6)          BN-folded biases, one column per conv
        # out_ref:   (c2, H*W)       NCHW-flat output block

        def conv1x1(x, w_ref, bcol, cout):
            acc = jnp.dot(w_ref[...], x, preferred_element_type=jnp.float32)
            acc = acc + b_ref[0:cout, bcol:bcol + 1]
            return silu(acc)

        def conv3x3(x, w_ref, bcol, cout):
            # im2col along sublanes: 9 shifted+masked copies -> ONE contraction.
            taps = []
            t = 0
            for dy in (-1, 0, 1):
                for dx in (-1, 0, 1):
                    s = dy * W + dx                          # flat spatial shift
                    shifted = x if s == 0 else jnp.roll(x, -s, axis=1)
                    taps.append(shifted * masks_ref[t:t + 1, :])
                    t += 1
            col = jnp.concatenate(taps, axis=0)              # (9*Cin, H*W)
            acc = jnp.dot(w_ref[...], col, preferred_element_type=jnp.float32)
            acc = acc + b_ref[0:cout, bcol:bcol + 1]
            return silu(acc)

        x = x_ref[...]                                       # (c1, HW)
        y = conv3x3(x, w_cv_ref, 0, c2)                      # ConvC3.cv      3x3 c1->c2
        a = conv1x1(y, w_cv1_ref, 1, c_)                     # C3.cv1         1x1 c2->c_
        h = conv1x1(a, w_mcv1_ref, 2, c_)                    # Bottleneck.cv1 1x1 c_->c_
        a = a + conv3x3(h, w_mcv2_ref, 3, c_)                # Bottleneck.cv2 3x3 + residual
        b = conv1x1(y, w_cv2_ref, 4, c_)                     # C3.cv2         1x1 c2->c_
        cat = jnp.concatenate([a, b], axis=0)                # channel concat (2c_, HW)
        out_ref[...] = conv1x1(cat, w_cv3_ref, 5, c2)        # C3.cv3         1x1 -> c2

    return kernel


# ---------------------------------------------------------------------------
# Wrapper: fold BN, pack weights/biases/masks, launch the single fused kernel
# ---------------------------------------------------------------------------
def _fold_bn(p, eps=1e-5):
    scale = p["gamma"] / jnp.sqrt(p["var"] + eps)
    w_eff = (p["w"] * scale[None, None, None, :]).astype(jnp.float32)
    b_eff = (p["beta"] - p["mean"] * scale).astype(jnp.float32)
    return w_eff, b_eff


def _weight_matrix(w_eff):
    # HWIO (K, K, Cin, Cout) -> (Cout, K*K*Cin); column index = (ky*K+kx)*Cin + ci
    K1, K2, Cin, Cout = w_eff.shape
    return jnp.transpose(w_eff, (3, 0, 1, 2)).reshape(Cout, K1 * K2 * Cin)


def _border_masks(H, W):
    # 'SAME' zero-padding validity masks for each of the 9 taps, flattened HW.
    ys, xs = jnp.meshgrid(jnp.arange(H), jnp.arange(W), indexing="ij")
    ys, xs = ys.reshape(-1), xs.reshape(-1)
    rows = []
    for dy in (-1, 0, 1):
        for dx in (-1, 0, 1):
            ok = (ys + dy >= 0) & (ys + dy < H) & (xs + dx >= 0) & (xs + dx < W)
            rows.append(ok.astype(jnp.float32))
    return jnp.stack(rows, axis=0)                           # (9, H*W)


def reduction_search_block_small_pallas(x_nchw, params, eps=1e-5):
    """x_nchw: (N, C1, H, W) float32 (PyTorch layout). Returns (N, C2, H, W)."""
    N, C1, H, W = x_nchw.shape
    HW = H * W
    C2 = params["cv"]["w"].shape[-1]
    c_ = params["cv1"]["w"].shape[-1]

    x = x_nchw.reshape(N, C1, HW).astype(jnp.float32)        # NCHW-flat, no transpose
    masks = _border_masks(H, W)

    names = ("cv", "cv1", "m_cv1", "m_cv2", "cv2", "cv3")
    w_mats = []
    b_all = jnp.zeros((max(8, C2), len(names)), jnp.float32)
    for j, name in enumerate(names):
        w_eff, b_eff = _fold_bn(params[name], eps)
        w_mats.append(_weight_matrix(w_eff))
        b_all = b_all.at[: b_eff.shape[0], j].set(b_eff)
    w_cv, w_cv1, w_mcv1, w_mcv2, w_cv2, w_cv3 = w_mats

    kernel = _make_convc3_kernel(H, W, C2, c_)

    def whole(a):  # constant operand: one block covering the full array
        return pl.BlockSpec(a.shape, lambda n: (0,) * a.ndim)

    out = pl.pallas_call(
        kernel,
        out_shape=jax.ShapeDtypeStruct((N, C2, HW), jnp.float32),
        grid=(N,),
        in_specs=[
            pl.BlockSpec((None, C1, HW), lambda n: (n, 0, 0)),
            whole(masks),
            whole(w_cv), whole(w_cv1), whole(w_mcv1),
            whole(w_mcv2), whole(w_cv2), whole(w_cv3),
            whole(b_all),
        ],
        out_specs=pl.BlockSpec((None, C2, HW), lambda n: (n, 0, 0)),
        compiler_params=pltpu.CompilerParams(dimension_semantics=("parallel",)),
    )(x, masks, w_cv, w_cv1, w_mcv1, w_mcv2, w_cv2, w_cv3, b_all)

    return out.reshape(N, C2, H, W)


# ---------------------------------------------------------------------------
# Pure-JAX reference (for correctness check only)
# ---------------------------------------------------------------------------
def _ref_conv(x, p, eps=1e-5):
    y = lax.conv_general_dilated(x, p["w"], (1, 1), "SAME",
                                 dimension_numbers=("NHWC", "HWIO", "NHWC"))
    scale = p["gamma"] / jnp.sqrt(p["var"] + eps)
    y = y * scale + (p["beta"] - p["mean"] * scale)
    return jax.nn.silu(y)


def reference_forward(x_nchw, params):
    x = jnp.transpose(x_nchw, (0, 2, 3, 1))
    y = _ref_conv(x, params["cv"])
    a = _ref_conv(y, params["cv1"])
    a = a + _ref_conv(_ref_conv(a, params["m_cv1"]), params["m_cv2"])
    b = _ref_conv(y, params["cv2"])
    out = _ref_conv(jnp.concatenate([a, b], axis=-1), params["cv3"])
    return jnp.transpose(out, (0, 3, 1, 2))


# ---------------------------------------------------------------------------
# Deterministic parameter init
# ---------------------------------------------------------------------------
def _init_conv(key, k, cin, cout):
    kw, kg, kb, km, kv = jax.random.split(key, 5)
    return dict(
        w=jax.random.normal(kw, (k, k, cin, cout), jnp.float32)
          / jnp.sqrt(float(k * k * cin)),
        gamma=jax.random.uniform(kg, (cout,), jnp.float32, 0.8, 1.2),
        beta=0.1 * jax.random.normal(kb, (cout,), jnp.float32),
        mean=0.1 * jax.random.normal(km, (cout,), jnp.float32),
        var=jax.random.uniform(kv, (cout,), jnp.float32, 0.5, 1.5),
    )


def init_params(key, c1, c2):
    c_ = int(c2 * 0.5)  # C3 hidden width (e = 0.5 * e0 = 0.5)
    ks = jax.random.split(key, 6)
    return {
        "cv":    _init_conv(ks[0], 3, c1, c2),        # ConvC3.cv    (e0 = 1.0 -> c2)
        "cv1":   _init_conv(ks[1], 1, c2, c_),        # C3.cv1
        "cv2":   _init_conv(ks[2], 1, c2, c_),        # C3.cv2
        "cv3":   _init_conv(ks[3], 1, 2 * c_, c2),    # C3.cv3
        "m_cv1": _init_conv(ks[4], 1, c_, c_),        # Bottleneck.cv1
        "m_cv2": _init_conv(ks[5], 3, c_, c_),        # Bottleneck.cv2
    }


if __name__ == "__main__":
    key = jax.random.PRNGKey(0)
    kx, kp = jax.random.split(key)
    N, C1, C2, H, W = 2, 4, 8, 16, 16
    x = jax.random.normal(kx, (N, C1, H, W), jnp.float32)   # NCHW, like PyTorch
    params = init_params(kp, C1, C2)

    fwd = jax.jit(reduction_search_block_small_pallas)
    out = jax.block_until_ready(fwd(x, params))

    ref = jax.block_until_ready(reference_forward(x, params))
    assert out.shape == (N, C2, H, W)
    err = float(jnp.max(jnp.abs(out - ref)))
    assert jnp.allclose(out, ref, atol=1e-4, rtol=1e-4), err
    print("KERNEL_OK")
</pallas_src>

<mosaic_0001>
module attributes {stable_mosaic.version = 11 : i64} {
  func.func @kernel(%arg0: i32, %arg1: memref<1x4x256xf32, #tpu.memory_space<vmem>>, %arg2: memref<9x256xf32, #tpu.memory_space<vmem>>, %arg3: memref<8x36xf32, #tpu.memory_space<vmem>>, %arg4: memref<4x8xf32, #tpu.memory_space<vmem>>, %arg5: memref<4x4xf32, #tpu.memory_space<vmem>>, %arg6: memref<4x36xf32, #tpu.memory_space<vmem>>, %arg7: memref<4x8xf32, #tpu.memory_space<vmem>>, %arg8: memref<8x8xf32, #tpu.memory_space<vmem>>, %arg9: memref<8x6xf32, #tpu.memory_space<vmem>>, %arg10: memref<1x8x256xf32, #tpu.memory_space<vmem>>) attributes {dimension_semantics = [#tpu.dimension_semantics<parallel>], iteration_bounds = array<i64: 2>, scalar_prefetch = 0 : i64, scratch_operands = 0 : i64, tpu.core_type = #tpu.core_type<tc>, window_params = [{transform_indices = @transform_0, window_bounds = array<i64: 1, 4, 256>}, {pipeline_mode = #tpu.pipeline_mode<synchronous>, transform_indices = @transform_1, window_bounds = array<i64: 9, 256>}, {pipeline_mode = #tpu.pipeline_mode<synchronous>, transform_indices = @transform_2, window_bounds = array<i64: 8, 36>}, {pipeline_mode = #tpu.pipeline_mode<synchronous>, transform_indices = @transform_3, window_bounds = array<i64: 4, 8>}, {pipeline_mode = #tpu.pipeline_mode<synchronous>, transform_indices = @transform_4, window_bounds = array<i64: 4, 4>}, {pipeline_mode = #tpu.pipeline_mode<synchronous>, transform_indices = @transform_5, window_bounds = array<i64: 4, 36>}, {pipeline_mode = #tpu.pipeline_mode<synchronous>, transform_indices = @transform_6, window_bounds = array<i64: 4, 8>}, {pipeline_mode = #tpu.pipeline_mode<synchronous>, transform_indices = @transform_7, window_bounds = array<i64: 8, 8>}, {pipeline_mode = #tpu.pipeline_mode<synchronous>, transform_indices = @transform_8, window_bounds = array<i64: 8, 6>}, {transform_indices = @transform_9, window_bounds = array<i64: 1, 8, 256>}]} {
    %c0 = arith.constant 0 : index
    %c0_0 = arith.constant 0 : index
    %c0_1 = arith.constant 0 : index
    %0 = vector.load %arg1[%c0, %c0_0, %c0_1] : memref<1x4x256xf32, #tpu.memory_space<vmem>>, vector<1x4x256xf32>
    %1 = vector.shape_cast %0 : vector<1x4x256xf32> to vector<4x256xf32>
    %2 = vector.extract_strided_slice %1 {offsets = [0, 239], sizes = [4, 17], strides = [1, 1]} : vector<4x256xf32> to vector<4x17xf32>
    %3 = vector.extract_strided_slice %1 {offsets = [0, 0], sizes = [4, 239], strides = [1, 1]} : vector<4x256xf32> to vector<4x239xf32>
    %4 = tpu.concatenate %2, %3 in 1 : vector<4x17xf32>, vector<4x239xf32> -> vector<4x256xf32>
    %c0_2 = arith.constant 0 : index
    %c0_3 = arith.constant 0 : index
    %5 = vector.load %arg2[%c0_2, %c0_3] : memref<9x256xf32, #tpu.memory_space<vmem>>, vector<1x256xf32>
    %6 = vector.broadcast %5 : vector<1x256xf32> to vector<4x256xf32>
    %7 = arith.mulf %4, %6 : vector<4x256xf32>
    %8 = vector.extract_strided_slice %1 {offsets = [0, 240], sizes = [4, 16], strides = [1, 1]} : vector<4x256xf32> to vector<4x16xf32>
    %9 = vector.extract_strided_slice %1 {offsets = [0, 0], sizes = [4, 240], strides = [1, 1]} : vector<4x256xf32> to vector<4x240xf32>
    %10 = tpu.concatenate %8, %9 in 1 : vector<4x16xf32>, vector<4x240xf32> -> vector<4x256xf32>
    %c1 = arith.constant 1 : index
    %c0_4 = arith.constant 0 : index
    %11 = vector.load %arg2[%c1, %c0_4] : memref<9x256xf32, #tpu.memory_space<vmem>>, vector<1x256xf32>
    %12 = vector.broadcast %11 : vector<1x256xf32> to vector<4x256xf32>
    %13 = arith.mulf %10, %12 : vector<4x256xf32>
    %14 = vector.extract_strided_slice %1 {offsets = [0, 241], sizes = [4, 15], strides = [1, 1]} : vector<4x256xf32> to vector<4x15xf32>
    %15 = vector.extract_strided_slice %1 {offsets = [0, 0], sizes = [4, 241], strides = [1, 1]} : vector<4x256xf32> to vector<4x241xf32>
    %16 = tpu.concatenate %14, %15 in 1 : vector<4x15xf32>, vector<4x241xf32> -> vector<4x256xf32>
    %c2 = arith.constant 2 : index
    %c0_5 = arith.constant 0 : index
    %17 = vector.load %arg2[%c2, %c0_5] : memref<9x256xf32, #tpu.memory_space<vmem>>, vector<1x256xf32>
    %18 = vector.broadcast %17 : vector<1x256xf32> to vector<4x256xf32>
    %19 = arith.mulf %16, %18 : vector<4x256xf32>
    %20 = vector.extract_strided_slice %1 {offsets = [0, 255], sizes = [4, 1], strides = [1, 1]} : vector<4x256xf32> to vector<4x1xf32>
    %21 = vector.extract_strided_slice %1 {offsets = [0, 0], sizes = [4, 255], strides = [1, 1]} : vector<4x256xf32> to vector<4x255xf32>
    %22 = tpu.concatenate %20, %21 in 1 : vector<4x1xf32>, vector<4x255xf32> -> vector<4x256xf32>
    %c3 = arith.constant 3 : index
    %c0_6 = arith.constant 0 : index
    %23 = vector.load %arg2[%c3, %c0_6] : memref<9x256xf32, #tpu.memory_space<vmem>>, vector<1x256xf32>
    %24 = vector.broadcast %23 : vector<1x256xf32> to vector<4x256xf32>
    %25 = arith.mulf %22, %24 : vector<4x256xf32>
    %c4 = arith.constant 4 : index
    %c0_7 = arith.constant 0 : index
    %26 = vector.load %arg2[%c4, %c0_7] : memref<9x256xf32, #tpu.memory_space<vmem>>, vector<1x256xf32>
    %27 = vector.broadcast %26 : vector<1x256xf32> to vector<4x256xf32>
    %28 = arith.mulf %1, %27 : vector<4x256xf32>
    %29 = vector.extract_strided_slice %1 {offsets = [0, 1], sizes = [4, 255], strides = [1, 1]} : vector<4x256xf32> to vector<4x255xf32>
    %30 = vector.extract_strided_slice %1 {offsets = [0, 0], sizes = [4, 1], strides = [1, 1]} : vector<4x256xf32> to vector<4x1xf32>
    %31 = tpu.concatenate %29, %30 in 1 : vector<4x255xf32>, vector<4x1xf32> -> vector<4x256xf32>
    %c5 = arith.constant 5 : index
    %c0_8 = arith.constant 0 : index
    %32 = vector.load %arg2[%c5, %c0_8] : memref<9x256xf32, #tpu.memory_space<vmem>>, vector<1x256xf32>
    %33 = vector.broadcast %32 : vector<1x256xf32> to vector<4x256xf32>
    %34 = arith.mulf %31, %33 : vector<4x256xf32>
    %35 = vector.extract_strided_slice %1 {offsets = [0, 15], sizes = [4, 241], strides = [1, 1]} : vector<4x256xf32> to vector<4x241xf32>
    %36 = vector.extract_strided_slice %1 {offsets = [0, 0], sizes = [4, 15], strides = [1, 1]} : vector<4x256xf32> to vector<4x15xf32>
    %37 = tpu.concatenate %35, %36 in 1 : vector<4x241xf32>, vector<4x15xf32> -> vector<4x256xf32>
    %c6 = arith.constant 6 : index
    %c0_9 = arith.constant 0 : index
    %38 = vector.load %arg2[%c6, %c0_9] : memref<9x256xf32, #tpu.memory_space<vmem>>, vector<1x256xf32>
    %39 = vector.broadcast %38 : vector<1x256xf32> to vector<4x256xf32>
    %40 = arith.mulf %37, %39 : vector<4x256xf32>
    %41 = vector.extract_strided_slice %1 {offsets = [0, 16], sizes = [4, 240], strides = [1, 1]} : vector<4x256xf32> to vector<4x240xf32>
    %42 = vector.extract_strided_slice %1 {offsets = [0, 0], sizes = [4, 16], strides = [1, 1]} : vector<4x256xf32> to vector<4x16xf32>
    %43 = tpu.concatenate %41, %42 in 1 : vector<4x240xf32>, vector<4x16xf32> -> vector<4x256xf32>
    %c7 = arith.constant 7 : index
    %c0_10 = arith.constant 0 : index
    %44 = vector.load %arg2[%c7, %c0_10] : memref<9x256xf32, #tpu.memory_space<vmem>>, vector<1x256xf32>
    %45 = vector.broadcast %44 : vector<1x256xf32> to vector<4x256xf32>
    %46 = arith.mulf %43, %45 : vector<4x256xf32>
    %47 = vector.extract_strided_slice %1 {offsets = [0, 17], sizes = [4, 239], strides = [1, 1]} : vector<4x256xf32> to vector<4x239xf32>
    %48 = vector.extract_strided_slice %1 {offsets = [0, 0], sizes = [4, 17], strides = [1, 1]} : vector<4x256xf32> to vector<4x17xf32>
    %49 = tpu.concatenate %47, %48 in 1 : vector<4x239xf32>, vector<4x17xf32> -> vector<4x256xf32>
    %c8 = arith.constant 8 : index
    %c0_11 = arith.constant 0 : index
    %50 = vector.load %arg2[%c8, %c0_11] : memref<9x256xf32, #tpu.memory_space<vmem>>, vector<1x256xf32>
    %51 = vector.broadcast %50 : vector<1x256xf32> to vector<4x256xf32>
    %52 = arith.mulf %49, %51 : vector<4x256xf32>
    %53 = tpu.concatenate %7, %13, %19, %25, %28, %34, %40, %46, %52 in 0 : vector<4x256xf32>, vector<4x256xf32>, vector<4x256xf32>, vector<4x256xf32>, vector<4x256xf32>, vector<4x256xf32>, vector<4x256xf32>, vector<4x256xf32>, vector<4x256xf32> -> vector<36x256xf32>
    %c0_12 = arith.constant 0 : index
    %c0_13 = arith.constant 0 : index
    %54 = vector.load %arg3[%c0_12, %c0_13] : memref<8x36xf32, #tpu.memory_space<vmem>>, vector<8x36xf32>
    %cst = arith.constant dense<0.000000e+00> : vector<8x256xf32>
    %55 = tpu.matmul %54, %53, %cst {dimension_numbers = #tpu.dot_dimension_numbers<[1], [0], [0], [1], [0, 0, 1, 1], [], []>} : vector<8x36xf32>, vector<36x256xf32>, vector<8x256xf32> -> vector<8x256xf32>
    %c0_14 = arith.constant 0 : index
    %c0_15 = arith.constant 0 : index
    %56 = vector.load %arg9[%c0_14, %c0_15] : memref<8x6xf32, #tpu.memory_space<vmem>>, vector<8x1xf32>
    %57 = vector.broadcast %56 : vector<8x1xf32> to vector<8x256xf32>
    %58 = arith.addf %55, %57 : vector<8x256xf32>
    %59 = arith.negf %58 : vector<8x256xf32>
    %60 = math.exp %59 : vector<8x256xf32>
    %cst_16 = arith.constant 1.000000e+00 : f32
    %61 = vector.broadcast %cst_16 : f32 to vector<8x256xf32>
    %62 = arith.addf %61, %60 : vector<8x256xf32>
    %63 = arith.divf %61, %62 : vector<8x256xf32>
    %64 = arith.mulf %58, %63 : vector<8x256xf32>
    %c0_17 = arith.constant 0 : index
    %c0_18 = arith.constant 0 : index
    %65 = vector.load %arg4[%c0_17, %c0_18] : memref<4x8xf32, #tpu.memory_space<vmem>>, vector<4x8xf32>
    %cst_19 = arith.constant dense<0.000000e+00> : vector<4x256xf32>
    %66 = tpu.matmul %65, %64, %cst_19 {dimension_numbers = #tpu.dot_dimension_numbers<[1], [0], [0], [1], [0, 0, 1, 1], [], []>} : vector<4x8xf32>, vector<8x256xf32>, vector<4x256xf32> -> vector<4x256xf32>
    %c0_20 = arith.constant 0 : index
    %c1_21 = arith.constant 1 : index
    %67 = vector.load %arg9[%c0_20, %c1_21] : memref<8x6xf32, #tpu.memory_space<vmem>>, vector<4x1xf32>
    %68 = vector.broadcast %67 : vector<4x1xf32> to vector<4x256xf32>
    %69 = arith.addf %66, %68 : vector<4x256xf32>
    %70 = arith.negf %69 : vector<4x256xf32>
    %71 = math.exp %70 : vector<4x256xf32>
    %cst_22 = arith.constant 1.000000e+00 : f32
    %72 = vector.broadcast %cst_22 : f32 to vector<4x256xf32>
    %73 = arith.addf %72, %71 : vector<4x256xf32>
    %74 = arith.divf %72, %73 : vector<4x256xf32>
    %75 = arith.mulf %69, %74 : vector<4x256xf32>
    %c0_23 = arith.constant 0 : index
    %c0_24 = arith.constant 0 : index
    %76 = vector.load %arg5[%c0_23, %c0_24] : memref<4x4xf32, #tpu.memory_space<vmem>>, vector<4x4xf32>
    %cst_25 = arith.constant dense<0.000000e+00> : vector<4x256xf32>
    %77 = tpu.matmul %76, %75, %cst_25 {dimension_numbers = #tpu.dot_dimension_numbers<[1], [0], [0], [1], [0, 0, 1, 1], [], []>} : vector<4x4xf32>, vector<4x256xf32>, vector<4x256xf32> -> vector<4x256xf32>
    %c0_26 = arith.constant 0 : index
    %c2_27 = arith.constant 2 : index
    %78 = vector.load %arg9[%c0_26, %c2_27] : memref<8x6xf32, #tpu.memory_space<vmem>>, vector<4x1xf32>
    %79 = vector.broadcast %78 : vector<4x1xf32> to vector<4x256xf32>
    %80 = arith.addf %77, %79 : vector<4x256xf32>
    %81 = arith.negf %80 : vector<4x256xf32>
    %82 = math.exp %81 : vector<4x256xf32>
    %cst_28 = arith.constant 1.000000e+00 : f32
    %83 = vector.broadcast %cst_28 : f32 to vector<4x256xf32>
    %84 = arith.addf %83, %82 : vector<4x256xf32>
    %85 = arith.divf %83, %84 : vector<4x256xf32>
    %86 = arith.mulf %80, %85 : vector<4x256xf32>
    %87 = vector.extract_strided_slice %86 {offsets = [0, 239], sizes = [4, 17], strides = [1, 1]} : vector<4x256xf32> to vector<4x17xf32>
    %88 = vector.extract_strided_slice %86 {offsets = [0, 0], sizes = [4, 239], strides = [1, 1]} : vector<4x256xf32> to vector<4x239xf32>
    %89 = tpu.concatenate %87, %88 in 1 : vector<4x17xf32>, vector<4x239xf32> -> vector<4x256xf32>
    %c0_29 = arith.constant 0 : index
    %c0_30 = arith.constant 0 : index
    %90 = vector.load %arg2[%c0_29, %c0_30] : memref<9x256xf32, #tpu.memory_space<vmem>>, vector<1x256xf32>
    %91 = vector.broadcast %90 : vector<1x256xf32> to vector<4x256xf32>
    %92 = arith.mulf %89, %91 : vector<4x256xf32>
    %93 = vector.extract_strided_slice %86 {offsets = [0, 240], sizes = [4, 16], strides = [1, 1]} : vector<4x256xf32> to vector<4x16xf32>
    %94 = vector.extract_strided_slice %86 {offsets = [0, 0], sizes = [4, 240], strides = [1, 1]} : vector<4x256xf32> to vector<4x240xf32>
    %95 = tpu.concatenate %93, %94 in 1 : vector<4x16xf32>, vector<4x240xf32> -> vector<4x256xf32>
    %c1_31 = arith.constant 1 : index
    %c0_32 = arith.constant 0 : index
    %96 = vector.load %arg2[%c1_31, %c0_32] : memref<9x256xf32, #tpu.memory_space<vmem>>, vector<1x256xf32>
    %97 = vector.broadcast %96 : vector<1x256xf32> to vector<4x256xf32>
    %98 = arith.mulf %95, %97 : vector<4x256xf32>
    %99 = vector.extract_strided_slice %86 {offsets = [0, 241], sizes = [4, 15], strides = [1, 1]} : vector<4x256xf32> to vector<4x15xf32>
    %100 = vector.extract_strided_slice %86 {offsets = [0, 0], sizes = [4, 241], strides = [1, 1]} : vector<4x256xf32> to vector<4x241xf32>
    %101 = tpu.concatenate %99, %100 in 1 : vector<4x15xf32>, vector<4x241xf32> -> vector<4x256xf32>
    %c2_33 = arith.constant 2 : index
    %c0_34 = arith.constant 0 : index
    %102 = vector.load %arg2[%c2_33, %c0_34] : memref<9x256xf32, #tpu.memory_space<vmem>>, vector<1x256xf32>
    %103 = vector.broadcast %102 : vector<1x256xf32> to vector<4x256xf32>
    %104 = arith.mulf %101, %103 : vector<4x256xf32>
    %105 = vector.extract_strided_slice %86 {offsets = [0, 255], sizes = [4, 1], strides = [1, 1]} : vector<4x256xf32> to vector<4x1xf32>
    %106 = vector.extract_strided_slice %86 {offsets = [0, 0], sizes = [4, 255], strides = [1, 1]} : vector<4x256xf32> to vector<4x255xf32>
    %107 = tpu.concatenate %105, %106 in 1 : vector<4x1xf32>, vector<4x255xf32> -> vector<4x256xf32>
    %c3_35 = arith.constant 3 : index
    %c0_36 = arith.constant 0 : index
    %108 = vector.load %arg2[%c3_35, %c0_36] : memref<9x256xf32, #tpu.memory_space<vmem>>, vector<1x256xf32>
    %109 = vector.broadcast %108 : vector<1x256xf32> to vector<4x256xf32>
    %110 = arith.mulf %107, %109 : vector<4x256xf32>
    %c4_37 = arith.constant 4 : index
    %c0_38 = arith.constant 0 : index
    %111 = vector.load %arg2[%c4_37, %c0_38] : memref<9x256xf32, #tpu.memory_space<vmem>>, vector<1x256xf32>
    %112 = vector.broadcast %111 : vector<1x256xf32> to vector<4x256xf32>
    %113 = arith.mulf %86, %112 : vector<4x256xf32>
    %114 = vector.extract_strided_slice %86 {offsets = [0, 1], sizes = [4, 255], strides = [1, 1]} : vector<4x256xf32> to vector<4x255xf32>
    %115 = vector.extract_strided_slice %86 {offsets = [0, 0], sizes = [4, 1], strides = [1, 1]} : vector<4x256xf32> to vector<4x1xf32>
    %116 = tpu.concatenate %114, %115 in 1 : vector<4x255xf32>, vector<4x1xf32> -> vector<4x256xf32>
    %c5_39 = arith.constant 5 : index
    %c0_40 = arith.constant 0 : index
    %117 = vector.load %arg2[%c5_39, %c0_40] : memref<9x256xf32, #tpu.memory_space<vmem>>, vector<1x256xf32>
    %118 = vector.broadcast %117 : vector<1x256xf32> to vector<4x256xf32>
    %119 = arith.mulf %116, %118 : vector<4x256xf32>
    %120 = vector.extract_strided_slice %86 {offsets = [0, 15], sizes = [4, 241], strides = [1, 1]} : vector<4x256xf32> to vector<4x241xf32>
    %121 = vector.extract_strided_slice %86 {offsets = [0, 0], sizes = [4, 15], strides = [1, 1]} : vector<4x256xf32> to vector<4x15xf32>
    %122 = tpu.concatenate %120, %121 in 1 : vector<4x241xf32>, vector<4x15xf32> -> vector<4x256xf32>
    %c6_41 = arith.constant 6 : index
    %c0_42 = arith.constant 0 : index
    %123 = vector.load %arg2[%c6_41, %c0_42] : memref<9x256xf32, #tpu.memory_space<vmem>>, vector<1x256xf32>
    %124 = vector.broadcast %123 : vector<1x256xf32> to vector<4x256xf32>
    %125 = arith.mulf %122, %124 : vector<4x256xf32>
    %126 = vector.extract_strided_slice %86 {offsets = [0, 16], sizes = [4, 240], strides = [1, 1]} : vector<4x256xf32> to vector<4x240xf32>
    %127 = vector.extract_strided_slice %86 {offsets = [0, 0], sizes = [4, 16], strides = [1, 1]} : vector<4x256xf32> to vector<4x16xf32>
    %128 = tpu.concatenate %126, %127 in 1 : vector<4x240xf32>, vector<4x16xf32> -> vector<4x256xf32>
    %c7_43 = arith.constant 7 : index
    %c0_44 = arith.constant 0 : index
    %129 = vector.load %arg2[%c7_43, %c0_44] : memref<9x256xf32, #tpu.memory_space<vmem>>, vector<1x256xf32>
    %130 = vector.broadcast %129 : vector<1x256xf32> to vector<4x256xf32>
    %131 = arith.mulf %128, %130 : vector<4x256xf32>
    %132 = vector.extract_strided_slice %86 {offsets = [0, 17], sizes = [4, 239], strides = [1, 1]} : vector<4x256xf32> to vector<4x239xf32>
    %133 = vector.extract_strided_slice %86 {offsets = [0, 0], sizes = [4, 17], strides = [1, 1]} : vector<4x256xf32> to vector<4x17xf32>
    %134 = tpu.concatenate %132, %133 in 1 : vector<4x239xf32>, vector<4x17xf32> -> vector<4x256xf32>
    %c8_45 = arith.constant 8 : index
    %c0_46 = arith.constant 0 : index
    %135 = vector.load %arg2[%c8_45, %c0_46] : memref<9x256xf32, #tpu.memory_space<vmem>>, vector<1x256xf32>
    %136 = vector.broadcast %135 : vector<1x256xf32> to vector<4x256xf32>
    %137 = arith.mulf %134, %136 : vector<4x256xf32>
    %138 = tpu.concatenate %92, %98, %104, %110, %113, %119, %125, %131, %137 in 0 : vector<4x256xf32>, vector<4x256xf32>, vector<4x256xf32>, vector<4x256xf32>, vector<4x256xf32>, vector<4x256xf32>, vector<4x256xf32>, vector<4x256xf32>, vector<4x256xf32> -> vector<36x256xf32>
    %c0_47 = arith.constant 0 : index
    %c0_48 = arith.constant 0 : index
    %139 = vector.load %arg6[%c0_47, %c0_48] : memref<4x36xf32, #tpu.memory_space<vmem>>, vector<4x36xf32>
    %cst_49 = arith.constant dense<0.000000e+00> : vector<4x256xf32>
    %140 = tpu.matmul %139, %138, %cst_49 {dimension_numbers = #tpu.dot_dimension_numbers<[1], [0], [0], [1], [0, 0, 1, 1], [], []>} : vector<4x36xf32>, vector<36x256xf32>, vector<4x256xf32> -> vector<4x256xf32>
    %c0_50 = arith.constant 0 : index
    %c3_51 = arith.constant 3 : index
    %141 = vector.load %arg9[%c0_50, %c3_51] : memref<8x6xf32, #tpu.memory_space<vmem>>, vector<4x1xf32>
    %142 = vector.broadcast %141 : vector<4x1xf32> to vector<4x256xf32>
    %143 = arith.addf %140, %142 : vector<4x256xf32>
    %144 = arith.negf %143 : vector<4x256xf32>
    %145 = math.exp %144 : vector<4x256xf32>
    %cst_52 = arith.constant 1.000000e+00 : f32
    %146 = vector.broadcast %cst_52 : f32 to vector<4x256xf32>
    %147 = arith.addf %146, %145 : vector<4x256xf32>
    %148 = arith.divf %146, %147 : vector<4x256xf32>
    %149 = arith.mulf %143, %148 : vector<4x256xf32>
    %150 = arith.addf %75, %149 : vector<4x256xf32>
    %c0_53 = arith.constant 0 : index
    %c0_54 = arith.constant 0 : index
    %151 = vector.load %arg7[%c0_53, %c0_54] : memref<4x8xf32, #tpu.memory_space<vmem>>, vector<4x8xf32>
    %cst_55 = arith.constant dense<0.000000e+00> : vector<4x256xf32>
    %152 = tpu.matmul %151, %64, %cst_55 {dimension_numbers = #tpu.dot_dimension_numbers<[1], [0], [0], [1], [0, 0, 1, 1], [], []>} : vector<4x8xf32>, vector<8x256xf32>, vector<4x256xf32> -> vector<4x256xf32>
    %c0_56 = arith.constant 0 : index
    %c4_57 = arith.constant 4 : index
    %153 = vector.load %arg9[%c0_56, %c4_57] : memref<8x6xf32, #tpu.memory_space<vmem>>, vector<4x1xf32>
    %154 = vector.broadcast %153 : vector<4x1xf32> to vector<4x256xf32>
    %155 = arith.addf %152, %154 : vector<4x256xf32>
    %156 = arith.negf %155 : vector<4x256xf32>
    %157 = math.exp %156 : vector<4x256xf32>
    %cst_58 = arith.constant 1.000000e+00 : f32
    %158 = vector.broadcast %cst_58 : f32 to vector<4x256xf32>
    %159 = arith.addf %158, %157 : vector<4x256xf32>
    %160 = arith.divf %158, %159 : vector<4x256xf32>
    %161 = arith.mulf %155, %160 : vector<4x256xf32>
    %162 = tpu.concatenate %150, %161 in 0 : vector<4x256xf32>, vector<4x256xf32> -> vector<8x256xf32>
    %c0_59 = arith.constant 0 : index
    %c0_60 = arith.constant 0 : index
    %163 = vector.load %arg8[%c0_59, %c0_60] : memref<8x8xf32, #tpu.memory_space<vmem>>, vector<8x8xf32>
    %cst_61 = arith.constant dense<0.000000e+00> : vector<8x256xf32>
    %164 = tpu.matmul %163, %162, %cst_61 {dimension_numbers = #tpu.dot_dimension_numbers<[1], [0], [0], [1], [0, 0, 1, 1], [], []>} : vector<8x8xf32>, vector<8x256xf32>, vector<8x256xf32> -> vector<8x256xf32>
    %c0_62 = arith.constant 0 : index
    %c5_63 = arith.constant 5 : index
    %165 = vector.load %arg9[%c0_62, %c5_63] : memref<8x6xf32, #tpu.memory_space<vmem>>, vector<8x1xf32>
    %166 = vector.broadcast %165 : vector<8x1xf32> to vector<8x256xf32>
    %167 = arith.addf %164, %166 : vector<8x256xf32>
    %168 = arith.negf %167 : vector<8x256xf32>
    %169 = math.exp %168 : vector<8x256xf32>
    %cst_64 = arith.constant 1.000000e+00 : f32
    %170 = vector.broadcast %cst_64 : f32 to vector<8x256xf32>
    %171 = arith.addf %170, %169 : vector<8x256xf32>
    %172 = arith.divf %170, %171 : vector<8x256xf32>
    %173 = arith.mulf %167, %172 : vector<8x256xf32>
    %c0_65 = arith.constant 0 : index
    %c0_66 = arith.constant 0 : index
    %c0_67 = arith.constant 0 : index
    %174 = vector.load %arg10[%c0_65, %c0_66, %c0_67] : memref<1x8x256xf32, #tpu.memory_space<vmem>>, vector<1x8x256xf32>
    %175 = vector.shape_cast %174 : vector<1x8x256xf32> to vector<8x256xf32>
    %176 = vector.shape_cast %173 : vector<8x256xf32> to vector<1x8x256xf32>
    tpu.vector_store %arg10[%c0_65, %c0_66, %c0_67], %176 {strides = array<i32>} : memref<1x8x256xf32, #tpu.memory_space<vmem>>, vector<1x8x256xf32>,
    return
  }
  func.func @transform_0(%arg0: i32) -> (i32, i32, i32) {
    %c0_i32 = arith.constant 0 : i32
    %c0_i32_0 = arith.constant 0 : i32
    %c0_i32_1 = arith.constant 0 : i32
    return %arg0, %c0_i32, %c0_i32_0 : i32, i32, i32
  }
  func.func @transform_1(%arg0: i32) -> (i32, i32) {
    %c0_i32 = arith.constant 0 : i32
    %c0_i32_0 = arith.constant 0 : i32
    %c0_i32_1 = arith.constant 0 : i32
    return %c0_i32, %c0_i32_0 : i32, i32
  }
  func.func @transform_2(%arg0: i32) -> (i32, i32) {
    %c0_i32 = arith.constant 0 : i32
    %c0_i32_0 = arith.constant 0 : i32
    %c0_i32_1 = arith.constant 0 : i32
    return %c0_i32, %c0_i32_0 : i32, i32
  }
  func.func @transform_3(%arg0: i32) -> (i32, i32) {
    %c0_i32 = arith.constant 0 : i32
    %c0_i32_0 = arith.constant 0 : i32
    %c0_i32_1 = arith.constant 0 : i32
    return %c0_i32, %c0_i32_0 : i32, i32
  }
  func.func @transform_4(%arg0: i32) -> (i32, i32) {
    %c0_i32 = arith.constant 0 : i32
    %c0_i32_0 = arith.constant 0 : i32
    %c0_i32_1 = arith.constant 0 : i32
    return %c0_i32, %c0_i32_0 : i32, i32
  }
  func.func @transform_5(%arg0: i32) -> (i32, i32) {
    %c0_i32 = arith.constant 0 : i32
    %c0_i32_0 = arith.constant 0 : i32
    %c0_i32_1 = arith.constant 0 : i32
    return %c0_i32, %c0_i32_0 : i32, i32
  }
  func.func @transform_6(%arg0: i32) -> (i32, i32) {
    %c0_i32 = arith.constant 0 : i32
    %c0_i32_0 = arith.constant 0 : i32
    %c0_i32_1 = arith.constant 0 : i32
    return %c0_i32, %c0_i32_0 : i32, i32
  }
  func.func @transform_7(%arg0: i32) -> (i32, i32) {
    %c0_i32 = arith.constant 0 : i32
    %c0_i32_0 = arith.constant 0 : i32
    %c0_i32_1 = arith.constant 0 : i32
    return %c0_i32, %c0_i32_0 : i32, i32
  }
  func.func @transform_8(%arg0: i32) -> (i32, i32) {
    %c0_i32 = arith.constant 0 : i32
    %c0_i32_0 = arith.constant 0 : i32
    %c0_i32_1 = arith.constant 0 : i32
    return %c0_i32, %c0_i32_0 : i32, i32
  }
  func.func @transform_9(%arg0: i32) -> (i32, i32, i32) {
    %c0_i32 = arith.constant 0 : i32
    %c0_i32_0 = arith.constant 0 : i32
    %c0_i32_1 = arith.constant 0 : i32
    return %arg0, %c0_i32, %c0_i32_0 : i32, i32, i32
  }
}

</mosaic_0001>

<bundles_post_ra>
// kernel: reduction_search_block_small_pallas.1
= control target key start
LH: loop header
LB: loop body
LE: loop exit
PB: predicated region body
PF: predicated region fallthrough
CT: control target
= control target key end

     0   :  { %s1536_s30 = smov 0   ;;  %s1936_s0 = inlined_call_operand.vmem [shape: f32[2,4,256], index: 0, kind: input, shape index: {}]   ;;  %s1937_s1 = inlined_call_operand.vmem [shape: f32[9,256], index: 1, kind: input, shape index: {}]   ;;  %s1938_s2 = inlined_call_operand.vmem [shape: f32[8,36], index: 2, kind: input, shape index: {}]   ;;  %s1939_s3 = inlined_call_operand.vmem [shape: f32[4,8], index: 3, kind: input, shape index: {}]   ;;  %s1940_s4 = inlined_call_operand.vmem [shape: f32[4,4], index: 4, kind: input, shape index: {}]   ;;  %s1941_s5 = inlined_call_operand.vmem [shape: f32[4,36], index: 5, kind: input, shape index: {}]   ;;  %s1942_s6 = inlined_call_operand.vmem [shape: f32[4,8], index: 6, kind: input, shape index: {}]   ;;  %s1943_s7 = inlined_call_operand.vmem [shape: f32[8,8], index: 7, kind: input, shape index: {}]   ;;  %s1944_s8 = inlined_call_operand.vmem [shape: f32[8,6], index: 8, kind: input, shape index: {}]   ;;  %s1945_s9 = inlined_call_operand.vmem [shape: f32[2,8,256], index: 9, kind: output, shape index: {}]  }
   0x1 LB: > { %s1336_s10 = sadd.s32 4294967295, %s1470_s30   ;;  %p1340_p0 = scmp.ge.s32.totalorder %s1470_s30, 1  ;;  %s1470_s30 = sphi %s1536_s30, %s19_s30  }
   0x2   : > { %p287_p1 = scmp.lt.s32.totalorder %s1470_s30, 3 }
   0x4   : > { %p288_p2 = pnand %p1340_p0, %p287_p1 }
   0x5   : > { %p323_p3 = scmp.lt.s32.totalorder (!%p288_p2), %s1336_s10, 1  ;;  %s1472_s15 = smov (!%p288_p2), 16  }
   0x6   : > { %291 = sbr.rel (%p288_p2) target bundleno = 1240 (0x4d8), region = 56  ;;  %s1473_s16 = smov (!%p288_p2), 15  }
   0x7   : > { %s1474_s17 = smov (!%p288_p2), 1   ;;  %s1475_s18 = smov (!%p288_p2), 127  }
   0x8   : > { %s1476_s19 = smov (!%p288_p2), 113   ;;  %s1477_s20 = smov (!%p288_p2), 112  }
   0x9   : > { %s1478_s21 = smov (!%p288_p2), 111   ;;  %s1479_s22 = smov (!%p288_p2), 17  }
   0xb   : > { %s1963_s10 = smov (!%p323_p3, %s1336_s10), 1  ;;  %v1606_v26 = vld [vmem:[%s1937_s1 + $0x4] ss:$8 sm:$0x3]  ;;  %vm446_vm0 = vcmask 1043456   ;;  %vm535_vm1 = vcmask 908288  }
   0xc   : > { %s1385_s11 = sshll.u32 %s1963_s10, 3  ;;  %v442_v27 = vperm.slane %v1606_v26, 1  ;;  %v441_v29 = vperm.slane %v1606_v26, 0  ;;  %v1631_v46 = vld [vmem:[%s1937_s1 + $0x10] ss:$8 sm:$0x3] }
   0xd   : > { %s327_s14 = scalar_lea.vmem %s1936_s0, %s1385_s11  ;;  %v1636_v48 = vld [vmem:[%s1944_s8] sm:$0xff]  ;;  %v549_v49 = vperm.slane %v1631_v46, 1  ;;  %v1480_v50 = vmov 0   ;;  %vm457_vm2 = vcmask 1039360   ;;  %vm424_vm3 = vcmask 7168  }
   0xe   : > { %v1550_v0 = vld [vmem:[%s327_s14] sm:$0xff]  ;;  %v445_v30 = vrot.slane %v442_v27, 4  ;;  %1409 = vset.pattern.permute.xlu0 %v1480_v50  ;;  %vm483_vm4 = vcmask 924672   ;;  %vm509_vm5 = vcmask 916480   ;;  %vm1949_vm6 = vcmask 121856  }
   0xf   : > { %335 = vst [vmem:[#allocation1] ss:$2 sm:$0xff] %v1550_v0  ;;  %v1643_v52 = vld [vmem:[%s1937_s1 + $0x5] ss:$8 sm:$0x3]  ;;  %vm1948_vm7 = vcmask 130048  }
  0x10   : > { %v447_v32 = vsel %vm446_vm0, %v441_v29, %v445_v30  ;;  %v1650_v55 = vld [vmem:[%s1937_s1 + $0x3] ss:$8 sm:$0x3]  ;;  %v1655_v56 = vld [vmem:[%s1937_s1 + $0x7] ss:$8 sm:$0x3] }
  0x11   : > { %v449_v33 = vmul.f32 %v447_v32, %v1550_v0  ;;  %v471_v58 = vperm.slane %v1643_v52, 1  ;;  %v1663_v59 = vld [vmem:[%s1937_s1 + $0x2] ss:$8 sm:$0x3]  ;;  %v433_v62 = vperm.slane %v1650_v55, 1  ;;  %v523_v63 = vperm.slane %v1655_v56, 1 }
  0x12   : > { %v1669_v61 = vld [vmem:[%s1937_s1 + $0x6] ss:$8 sm:$0x3]  ;;  %vm1947_vm8 = vcmask 138240   ;;  %vm1946_vm9 = vcmask 293888  }
  0x16   : > { %v1553_v1 = vld.sshfl [vmem:[#allocation1 + $0x8] sm:$0xff pattern:$0x75316420] }
  0x17   : > { %340 = vst [vmem:[#allocation1] ss:$2 sm:$0xff] %v1550_v0 }
  0x1e   : > { %v1556_v2 = vld.sshfl [vmem:[#allocation1] sm:$0xff pattern:$0x75316420]  ;;  %v1558_v3 = vld.sshfl [vmem:[#allocation1 + $0x8] sm:$0xff pattern:$0x75316420] }
  0x1f   : > { %360 = vst [vmem:[#allocation1] ss:$2 sm:$0xff] %v1550_v0 }
  0x26   : > { %v361_v4 = vld.sshfl [vmem:[#allocation1 + $0x8] sm:$0xff pattern:$0x75316420] }
  0x27   : > { %362 = vrot.lane.b32.xlu0 %v361_v4, %s1472_s15  ;;  %365 = vst [vmem:[#allocation1] ss:$2 sm:$0xff] %v1550_v0 }
  0x2e   : > { %v366_v5 = vld.sshfl [vmem:[#allocation1] sm:$0xff pattern:$0x75316420]  ;;  %v367_v6 = vld.sshfl [vmem:[#allocation1 + $0x8] sm:$0xff pattern:$0x75316420] }
  0x2f   : > { %368 = vrot.lane.b32.xlu1 %v366_v5, %s1472_s15  ;;  %386 = vst [vmem:[#allocation1] ss:$2 sm:$0xff] %v1550_v0  ;;  %370 = vrot.lane.b32.xlu2 %v367_v6, %s1472_s15  ;;  %v407_v5 = vperm.slane %v1663_v59, 1 }
  0x36   : > { %v387_v7 = vld.sshfl [vmem:[#allocation1 + $0x8] sm:$0xff pattern:$0x75316420] }
  0x37   : > { %388 = vrot.lane.b32.xlu0 %v387_v7, %s1473_s16  ;;  %391 = vst [vmem:[#allocation1] ss:$2 sm:$0xff] %v1550_v0  ;;  %v522_v7 = vperm.slane %v1655_v56, 0 }
  0x3e   : > { %v392_v8 = vld.sshfl [vmem:[#allocation1] sm:$0xff pattern:$0x75316420]  ;;  %v393_v9 = vld.sshfl [vmem:[#allocation1 + $0x8] sm:$0xff pattern:$0x75316420] }
  0x3f   : > { %394 = vrot.lane.b32.xlu1 %v392_v8, %s1473_s16  ;;  %412 = vst [vmem:[#allocation1] ss:$2 sm:$0xff] %v1550_v0  ;;  %396 = vrot.lane.b32.xlu2 %v393_v9, %s1473_s16 }
  0x46   : > { %v413_v10 = vld.sshfl [vmem:[#allocation1 + $0x8] sm:$0xff pattern:$0x75316420] }
  0x47   : > { %414 = vrot.lane.b32.xlu0 %v413_v10, %s1474_s17  ;;  %417 = vst [vmem:[#allocation1] ss:$2 sm:$0xff] %v1550_v0 }
  0x4e   : > { %v418_v11 = vld.sshfl [vmem:[#allocation1] sm:$0xff pattern:$0x75316420]  ;;  %v419_v12 = vld.sshfl [vmem:[#allocation1 + $0x8] sm:$0xff pattern:$0x75316420] }
  0x4f   : > { %420 = vrot.lane.b32.xlu1 %v418_v11, %s1474_s17  ;;  %450 = vst [vmem:[#allocation1] ss:$2 sm:$0xff] %v1550_v0  ;;  %422 = vrot.lane.b32.xlu2 %v419_v12, %s1474_s17 }
  0x56   : > { %v451_v13 = vld.sshfl [vmem:[#allocation1] sm:$0xff pattern:$0x75316420]  ;;  %v452_v14 = vld.sshfl [vmem:[#allocation1 + $0x8] sm:$0xff pattern:$0x75316420] }
  0x57   : > { %453 = vrot.lane.b32.xlu0 %v451_v13, %s1475_s18  ;;  %455 = vrot.lane.b32.xlu1 %v452_v14, %s1475_s18  ;;  %461 = vst [vmem:[#allocation1] ss:$2 sm:$0xff] %v1550_v0  ;;  %v470_v13 = vperm.slane %v1643_v52, 0  ;;  %v1693_v14 = vld [vmem:[%s1937_s1 + $0x1] ss:$8 sm:$0x3] }
  0x5e   : > { %v462_v15 = vld.sshfl [vmem:[#allocation1] sm:$0xff pattern:$0x75316420] }
  0x5f   : > { %476 = vst [vmem:[#allocation1] ss:$2 sm:$0xff] %v1550_v0  ;;  %463 = vrot.lane.b32.xlu2 %v462_v15, %s1475_s18 }
  0x66   : > { %v477_v16 = vld.sshfl [vmem:[#allocation1] sm:$0xff pattern:$0x75316420]  ;;  %v478_v17 = vld.sshfl [vmem:[#allocation1 + $0x8] sm:$0xff pattern:$0x75316420] }
  0x67   : > { %479 = vrot.lane.b32.xlu0 %v477_v16, %s1476_s19  ;;  %481 = vrot.lane.b32.xlu1 %v478_v17, %s1476_s19  ;;  %487 = vst [vmem:[#allocation1] ss:$2 sm:$0xff] %v1550_v0 }
  0x6e   : > { %v488_v18 = vld.sshfl [vmem:[#allocation1] sm:$0xff pattern:$0x75316420] }
  0x6f   : > { %502 = vst [vmem:[#allocation1] ss:$2 sm:$0xff] %v1550_v0  ;;  %489 = vrot.lane.b32.xlu2 %v488_v18, %s1476_s19 }
  0x76   : > { %v503_v19 = vld.sshfl [vmem:[#allocation1] sm:$0xff pattern:$0x75316420]  ;;  %v504_v20 = vld.sshfl [vmem:[#allocation1 + $0x8] sm:$0xff pattern:$0x75316420] }
  0x77   : > { %505 = vrot.lane.b32.xlu0 %v503_v19, %s1477_s20  ;;  %513 = vst [vmem:[#allocation1] ss:$2 sm:$0xff] %v1550_v0 }
  0x7e   : > { %v514_v21 = vld.sshfl [vmem:[#allocation1] sm:$0xff pattern:$0x75316420] }
  0x7f   : > { %507 = vrot.lane.b32.xlu0 %v504_v20, %s1477_s20  ;;  %515 = vrot.lane.b32.xlu1 %v514_v21, %s1477_s20  ;;  %528 = vst [vmem:[#allocation1] ss:$2 sm:$0xff] %v1550_v0  ;;  %v432_v20 = vperm.slane %v1650_v55, 0 }
  0x86   : > { %v529_v22 = vld.sshfl [vmem:[#allocation1] sm:$0xff pattern:$0x75316420]  ;;  %v530_v23 = vld.sshfl [vmem:[#allocation1 + $0x8] sm:$0xff pattern:$0x75316420] }
  0x87   : > { %531 = vrot.lane.b32.xlu1 %v529_v22, %s1478_s21  ;;  %337 = vrot.lane.b32.xlu0 %v1553_v1, %s1479_s22  ;;  %539 = vst [vmem:[#allocation1] ss:$2 sm:$0xff] %v1550_v0 }
  0x88   : > { %533 = vrot.lane.b32.xlu2 %v530_v23, %s1478_s21 }
  0x89   : > { %v1601_v25 = vpop.permute.xlu2 %370 }
  0x8e   : > { %v540_v24 = vld.sshfl [vmem:[#allocation1] sm:$0xff pattern:$0x75316420] }
  0x8f   : > { %343 = vrot.lane.b32.xlu1 %v1556_v2, %s1479_s22  ;;  %567 = vst [vmem:[#allocation1] ss:$2 sm:$0xff] %v449_v33  ;;  %596 = vperm.xlu0 %1409, %v1636_v48   ;;  %v497_v2 = vperm.slane %v1669_v61, 1  ;;  %v496_v33 = vperm.slane %v1669_v61, 0 }
  0x90   : > { %541 = vrot.lane.b32.xlu2 %v540_v24, %s1478_s21 }
  0x96   : > { %v569_v22 = vld.sshfl [vmem:[#allocation1 + $0x8] sm:$0xff pattern:$0x75316420] }
  0x98   : > { %345 = vrot.lane.b32.xlu2 %v1558_v3, %s1479_s22 }
  0x99   : > { %v1609_v28 = vpop.permute.xlu0 %362  ;;  %v397_v31 = vpop.permute.xlu2 %396 }
  0xa1   : > { %v1618_v34 = vpop.permute.xlu1 %368 }
  0xa9   : > { %v1620_v35 = vpop.permute.xlu0 %388  ;;  %v423_v36 = vpop.permute.xlu2 %422 }
  0xb1   : > { %v1622_v37 = vpop.permute.xlu1 %394 }
  0xb2   : > { %v399_v9 = vsel %vm1949_vm6, %v1622_v37, %v397_v31  ;;  %v548_v31 = vperm.slane %v1631_v46, 0 }
  0xb3   : > { %v411_v19 = vmul.f32 %v407_v5, %v399_v9 }
  0xb9   : > { %v415_v38 = vpop.permute.xlu0 %414  ;;  %v464_v39 = vpop.permute.xlu2 %463 }
  0xc1   : > { %v421_v40 = vpop.permute.xlu1 %420 }
  0xc2   : > { %v425_v0 = vsel %vm424_vm3, %v421_v40, %v423_v36  ;;  %v428_v23 = vsel %vm424_vm3, %v415_v38, %v421_v40  ;;  %v380_v36 = vperm.slane %v1693_v14, 0 }
  0xc3   : > { %v437_v10 = vmul.f32 %v433_v62, %v425_v0 }
  0xc5   : > { %v563_v24 = vrot.slane %v437_v10, 4 }
  0xc9   : > { %v454_v41 = vpop.permute.xlu0 %453  ;;  %v490_v42 = vpop.permute.xlu2 %489 }
  0xca   : > { %v456_v43 = vpop.permute.xlu1 %455 }
  0xcb   : > { %v466_v60 = vsel %vm457_vm2, %v456_v43, %v464_v39  ;;  %v458_v15 = vsel %vm457_vm2, %v454_v41, %v456_v43  ;;  %v381_v39 = vperm.slane %v1693_v14, 1  ;;  %v436_v43 = vmul.f32 %v432_v20, %v428_v23 }
  0xcc   : > { %v475_v1 = vmul.f32 %v471_v58, %v466_v60  ;;  %v474_v32 = vmul.f32 %v470_v13, %v458_v15 }
  0xce   : > { %v575_v16 = vrot.slane %v475_v1, 4  ;;  %v574_v60 = vrot.slane %v474_v32, 4 }
  0xd0   : > { %v589_v40 = vsel %vm446_vm0, %v569_v22, %v575_v16 }
  0xd9   : > { %v1624_v44 = vpop.permute.xlu0 %479  ;;  %v482_v47 = vpop.permute.xlu1 %481 }
  0xda   : > { %v492_v6 = vsel %vm483_vm4, %v482_v47, %v490_v42  ;;  %v484_v41 = vsel %vm483_vm4, %v1624_v44, %v482_v47  ;;  %v406_v42 = vperm.slane %v1663_v59, 0  ;;  %v402_v44 = vsel %vm1949_vm6, %v1620_v35, %v1622_v37  ;;  %v568_v35 = vld.sshfl [vmem:[#allocation1] sm:$0xff pattern:$0x75316420] }
  0xdb   : > { %v501_v17 = vmul.f32 %v497_v2, %v492_v6  ;;  %v587_v47 = vsel %vm446_vm0, %v411_v19, %v563_v24  ;;  %v588_v9 = vsel %vm446_vm0, %v568_v35, %v574_v60  ;;  %vm785_vm6 = vcmask 31744  }
  0xdc   : > { %v410_v0 = vmul.f32 %v406_v42, %v402_v44 }
  0xe2   : > { %v1626_v45 = vpop.permute.xlu2 %533 }
  0xe9   : > { %v506_v51 = vpop.permute.xlu0 %505 }
  0xea   : > { %v542_v53 = vpop.permute.xlu2 %541 }
  0xeb   : > { %v544_v54 = vsel %vm535_vm1, %v1626_v45, %v542_v53  ;;  %v376_v53 = vsel %vm1948_vm7, %v1609_v28, %v1618_v34  ;;  %v1736_v28 = vld [vmem:[%s1937_s1] ss:$8 sm:$0x3] }
  0xec   : > { %v553_v57 = vmul.f32 %v549_v49, %v544_v54  ;;  %v384_v37 = vmul.f32 %v380_v36, %v376_v53  ;;  %v355_v6 = vperm.slane %v1736_v28, 1 }
  0xee   : > { %1355 = vmatpush.msk.msra.mxu1 %vm446_vm0, %v553_v57  ;;  %v373_v57 = vsel %vm1948_vm7, %v1618_v34, %v1601_v25  ;;  %v562_v25 = vrot.slane %v436_v43, 4  ;;  %v556_v16 = vrot.slane %v384_v37, 4  ;;  %vm696_vm7 = vcmask 64512  }
  0xef   : > { %v385_v1 = vmul.f32 %v381_v39, %v373_v57 }
  0xf0   : > { %v586_v15 = vsel %vm446_vm0, %v410_v0, %v562_v25 }
  0xf1   : > { %v508_v3 = vpop.permute.xlu0 %507  ;;  %v516_v4 = vpop.permute.xlu1 %515 }
  0xf2   : > { %v518_v8 = vsel %vm509_vm5, %v508_v3, %v516_v4  ;;  %v510_v11 = vsel %vm509_vm5, %v506_v51, %v508_v3  ;;  %v354_v4 = vperm.slane %v1736_v28, 0 }
  0xf3   : > { %v527_v12 = vmul.f32 %v523_v63, %v518_v8  ;;  %v526_v21 = vmul.f32 %v522_v7, %v510_v11  ;;  %v346_v8 = vpop.permute.xlu2 %345 }
  0xf5   : > { %v581_v18 = vrot.slane %v527_v12, 4  ;;  %v580_v50 = vrot.slane %v526_v21, 4  ;;  %v592_v21 = vld [vmem:[%s1938_s2] sm:$0xff] }
  0xf7   : > { %v591_v30 = vsel %vm446_vm0, %v501_v17, %v581_v18  ;;  %v557_v17 = vrot.slane %v385_v1, 4 }
  0xf8   : > { %641 = vmatpush.msra.mxu1 %v591_v30 }
  0xf9   : > { %v532_v38 = vpop.permute.xlu1 %531  ;;  %v338_v3 = vpop.permute.xlu0 %337 }
  0xfa   : > { %v536_v51 = vsel %vm535_vm1, %v532_v38, %v1626_v45  ;;  %642 = vmatpush.msra.mxu1 %v589_v40  ;;  %v500_v45 = vmul.f32 %v496_v33, %v484_v41 }
  0xfb   : > { %v552_v54 = vmul.f32 %v548_v31, %v536_v51  ;;  %v1766_v51 = vld [vmem:[%s1944_s8] sm:$0xf] }
  0xfc   : > { %643 = vmatpush.msra.mxu1 %v587_v47  ;;  %v590_v34 = vsel %vm446_vm0, %v500_v45, %v580_v50  ;;  %v1481_v50 = vmov 1  }
  0xfd   : > { %1353 = vmatpush.msk.msra.mxu0 %vm446_vm0, %v552_v54  ;;  %1410 = vset.pattern.permute.xlu1 %v1481_v50 }
  0xfe   : > { %693 = vperm.xlu1 %1410, %v1766_v51  }
  0xff   : > { %621 = vmatpush.msra.mxu0 %v590_v34 }
 0x101   : > { %v344_v10 = vpop.permute.xlu1 %343  ;;  %622 = vmatpush.msra.mxu0 %v588_v9  ;;  %v597_v24 = vpop.permute.xlu0 %596 }
 0x102   : > { %v351_v11 = vsel %vm1947_vm8, %v338_v3, %v344_v10  ;;  %v348_v12 = vsel %vm1947_vm8, %v344_v10, %v346_v8 }
 0x103   : > { %v358_v18 = vmul.f32 %v354_v4, %v351_v11  ;;  %v359_v19 = vmul.f32 %v355_v6, %v348_v12  ;;  %623 = vmatpush.msra.mxu0 %v586_v15 }
 0x105   : > { %v584_v22 = vsel %vm446_vm0, %v358_v18, %v556_v16  ;;  %v585_v23 = vsel %vm446_vm0, %v359_v19, %v557_v17 }
 0x106   : > { %624 = vmatpush.msra.mxu0 %v584_v22  ;;  %644 = vmatpush.msra.mxu1 %v585_v23  ;;  %v689_v22 = vld [vmem:[%s1939_s3] sm:$0xf] }
 0x107   : > { %1354 = vmatmul.msk.f32.vlgmr.msra.gmra.mxu0 %vm1946_vm9, %v592_v21  ;;  %1356 = vmatmul.msk.f32.vlgmr.msra.gmra.mxu1 %vm1946_vm9, %v592_v21 }
 0x184   : > { %v626_v30 = vpop.f32.mrf.mxu0  ;;  %v646_v32 = vpop.f32.mrf.mxu1 }
 0x185   : > { %v627_v41 = vadd.f32 %v626_v30, %v597_v24  ;;  %v647_v38 = vadd.f32 %v646_v32, %v597_v24  ;;  %v694_v24 = vpop.permute.xlu1 %693 }
 0x187   : > { %v1357_v40 = vmul.f32 -1.442695, %v627_v41  ;;  %v1358_v43 = vmul.f32 -1.442695, %v647_v38 }
 0x189   : > { %1416 = vpow2.f32 %v1357_v40 }
 0x18a   : > { %1418 = vpow2.f32 %v1358_v43 }
 0x18f   : > { %v1417_v53 = vpop.eup %1416 }
 0x190   : > { %v1419_v44 = vpop.eup %1418  ;;  %v655_v47 = vadd.f32 1.0, %v1417_v53  ;;  %v1482_v53 = vmov 2  }
 0x191   : > { %v656_v54 = vadd.f32 1.0, %v1419_v44  ;;  %1411 = vset.pattern.permute.xlu2 %v1482_v53 }
 0x192   : > { %1420 = vrcp.f32 %v655_v47  ;;  %v668_v0 = vand.u32 2147483648, %v655_v47  ;;  %v666_v1 = vand.u32 2147483647, %v655_v47  ;;  %vm662_vm12 = vweird.f32 %v655_v47  ;;  %782 = vperm.xlu2 %1411, %v1766_v51  }
 0x193   : > { %1422 = vrcp.f32 %v656_v54  ;;  %v683_v3 = vand.u32 2147483648, %v656_v54  ;;  %v681_v9 = vand.u32 2147483647, %v656_v54  ;;  %vm677_vm14 = vweird.f32 %v656_v54 }
 0x194   : > { %v669_v11 = vor.u32 1.1754944e-38, %v668_v0  ;;  %vm667_vm15 = vcmp.eq.f32.partialorder %v666_v1, 8.507059e+37 }
 0x195   : > { %v684_v16 = vor.u32 1.1754944e-38, %v683_v3  ;;  %vm682_vm8 = vcmp.eq.f32.partialorder %v681_v9, 8.507059e+37 }
 0x198   : > { %v1421_v57 = vpop.eup %1420 }
 0x199   : > { %v1423_v60 = vpop.eup %1422  ;;  %v658_v45 = vmul.f32 %v1421_v57, %v655_v47  ;;  %vm663_vm10 = vweird.f32 %v1421_v57 }
 0x19a   : > { %v673_v35 = vmul.f32 %v1423_v60, %v656_v54  ;;  %vm678_vm11 = vweird.f32 %v1423_v60  ;;  %vm664_vm13 = vmor %vm662_vm12, %vm663_vm10 }
 0x19b   : > { %v659_v37 = vsub.f32 1.0, %v658_v45  ;;  %vm679_vm9 = vmor %vm677_vm14, %vm678_vm11 }
 0x19c   : > { %v674_v25 = vsub.f32 1.0, %v673_v35 }
 0x19d   : > { %v660_v34 = vmul.f32 %v1421_v57, %v659_v37 }
 0x19e   : > { %v675_v8 = vmul.f32 %v1423_v60, %v674_v25 }
 0x19f   : > { %v661_v10 = vadd.f32 %v1421_v57, %v660_v34 }
 0x1a0   : > { %v676_v12 = vadd.f32 %v1423_v60, %v675_v8 }
 0x1a1   : > { %v665_v15 = vsel %vm664_vm13, %v1421_v57, %v661_v10 }
 0x1a2   : > { %v670_v17 = vsel %vm667_vm15, %v669_v11, %v665_v15  ;;  %v680_v18 = vsel %vm679_vm9, %v1423_v60, %v676_v12 }
 0x1a3   : > { %v1769_v19 = vmul.f32 %v670_v17, %v627_v41  ;;  %v685_v21 = vsel %vm682_vm8, %v684_v16, %v680_v18 }
 0x1a4   : > { %v688_v23 = vmul.f32 %v685_v21, %v647_v38 }
 0x1a5   : > { %715 = vmatpush.msra.mxu2 %v1769_v19 }
 0x1a6   : > { %735 = vmatpush.msra.mxu3 %v688_v23  ;;  %1359 = vmatmul.msk.f32.vlgmr.msra.gmra.mxu2 %vm696_vm7, %v689_v22 }
 0x1a7   : > { %1360 = vmatmul.msk.f32.vlgmr.msra.gmra.mxu3 %vm696_vm7, %v689_v22 }
 0x229   : > { %v717_v30 = vpop.f32.mrf.mxu2 }
 0x22a   : > { %v718_v32 = vadd.f32 %v717_v30, %v694_v24  ;;  %v737_v40 = vpop.f32.mrf.mxu3 }
 0x22b   : > { %v738_v41 = vadd.f32 %v737_v40, %v694_v24  ;;  %v780_v24 = vld [vmem:[%s1940_s4] sm:$0xf] }
 0x22c   : > { %v1361_v43 = vmul.f32 -1.442695, %v718_v32 }
 0x22d   : > { %v1362_v50 = vmul.f32 -1.442695, %v738_v41 }
 0x22e   : > { %1424 = vpow2.f32 %v1361_v43 }
 0x22f   : > { %1426 = vpow2.f32 %v1362_v50 }
 0x234   : > { %v1425_v38 = vpop.eup %1424 }
 0x235   : > { %v1427_v44 = vpop.eup %1426  ;;  %v746_v47 = vadd.f32 1.0, %v1425_v38 }
 0x236   : > { %v747_v54 = vadd.f32 1.0, %v1427_v44 }
 0x237   : > { %1428 = vrcp.f32 %v746_v47  ;;  %v759_v0 = vand.u32 2147483648, %v746_v47  ;;  %v757_v1 = vand.u32 2147483647, %v746_v47  ;;  %vm753_vm10 = vweird.f32 %v746_v47 }
 0x238   : > { %1430 = vrcp.f32 %v747_v54  ;;  %v774_v3 = vand.u32 2147483648, %v747_v54  ;;  %v772_v9 = vand.u32 2147483647, %v747_v54  ;;  %vm768_vm12 = vweird.f32 %v747_v54 }
 0x239   : > { %v760_v11 = vor.u32 1.1754944e-38, %v759_v0  ;;  %vm758_vm13 = vcmp.eq.f32.partialorder %v757_v1, 8.507059e+37 }
 0x23a   : > { %v775_v16 = vor.u32 1.1754944e-38, %v774_v3  ;;  %vm773_vm15 = vcmp.eq.f32.partialorder %v772_v9, 8.507059e+37 }
 0x23d   : > { %v1429_v57 = vpop.eup %1428 }
 0x23e   : > { %v1431_v60 = vpop.eup %1430  ;;  %v749_v45 = vmul.f32 %v1429_v57, %v746_v47  ;;  %vm754_vm8 = vweird.f32 %v1429_v57 }
 0x23f   : > { %v764_v35 = vmul.f32 %v1431_v60, %v747_v54  ;;  %vm769_vm9 = vweird.f32 %v1431_v60  ;;  %vm755_vm11 = vmor %vm753_vm10, %vm754_vm8 }
 0x240   : > { %v750_v37 = vsub.f32 1.0, %v749_v45  ;;  %vm770_vm14 = vmor %vm768_vm12, %vm769_vm9 }
 0x241   : > { %v765_v25 = vsub.f32 1.0, %v764_v35 }
 0x242   : > { %v751_v34 = vmul.f32 %v1429_v57, %v750_v37 }
 0x243   : > { %v766_v8 = vmul.f32 %v1431_v60, %v765_v25 }
 0x244   : > { %v752_v10 = vadd.f32 %v1429_v57, %v751_v34 }
 0x245   : > { %v767_v12 = vadd.f32 %v1431_v60, %v766_v8 }
 0x246   : > { %v756_v15 = vsel %vm755_vm11, %v1429_v57, %v752_v10 }
 0x247   : > { %v761_v17 = vsel %vm758_vm13, %v760_v11, %v756_v15  ;;  %v771_v18 = vsel %vm770_vm14, %v1431_v60, %v767_v12 }
 0x248   : > { %v1778_v21 = vmul.f32 %v761_v17, %v718_v32  ;;  %v776_v22 = vsel %vm773_vm15, %v775_v16, %v771_v18  ;;  %v783_v32 = vpop.permute.xlu2 %782 }
 0x249   : > { %v1783_v30 = vmul.f32 %v776_v22, %v738_v41 }
 0x24a   : > { %1363 = vmatpush.msk.msrb.mxu2 %vm446_vm0, %v1778_v21 }
 0x24b   : > { %1365 = vmatpush.msk.msrb.mxu3 %vm446_vm0, %v1783_v30  ;;  %1364 = vmatmul.msk.f32.vlgmr.msrb.gmra.mxu2 %vm785_vm6, %v780_v24 }
 0x24c   : > { %1366 = vmatmul.msk.f32.vlgmr.msrb.gmra.mxu3 %vm785_vm6, %v780_v24  ;;  %1118 = vmatpush.msra.mxu2 %v1769_v19 }
 0x24d   : > { %1138 = vmatpush.msra.mxu3 %v688_v23 }
 0x2ce   : > { %v812_v40 = vpop.f32.mrf.mxu2 }
 0x2cf   : > { %v813_v43 = vadd.f32 %v812_v40, %v783_v32  ;;  %v832_v50 = vpop.f32.mrf.mxu3 }
 0x2d0   : > { %v833_v53 = vadd.f32 %v832_v50, %v783_v32  ;;  %v1095_v32 = vld [vmem:[%s1942_s6] sm:$0xf] }
 0x2d1   : > { %v1367_v38 = vmul.f32 -1.442695, %v813_v43  ;;  %1375 = vmatmul.msk.f32.vlgmr.msra.gmra.mxu2 %vm696_vm7, %v1095_v32  ;;  %1376 = vmatmul.msk.f32.vlgmr.msra.gmra.mxu3 %vm696_vm7, %v1095_v32 }
 0x2d2   : > { %v1368_v44 = vmul.f32 -1.442695, %v833_v53 }
 0x2d3   : > { %1432 = vpow2.f32 %v1367_v38 }
 0x2d4   : > { %1434 = vpow2.f32 %v1368_v44 }
 0x2d9   : > { %v1433_v41 = vpop.eup %1432 }
 0x2da   : > { %v1435_v47 = vpop.eup %1434  ;;  %v841_v54 = vadd.f32 1.0, %v1433_v41 }
 0x2db   : > { %v842_v57 = vadd.f32 1.0, %v1435_v47 }
 0x2dc   : > { %1436 = vrcp.f32 %v841_v54  ;;  %v854_v37 = vand.u32 2147483648, %v841_v54  ;;  %v852_v34 = vand.u32 2147483647, %v841_v54  ;;  %vm848_vm8 = vweird.f32 %v841_v54 }
 0x2dd   : > { %1438 = vrcp.f32 %v842_v57  ;;  %v869_v12 = vand.u32 2147483648, %v842_v57  ;;  %vm863_vm12 = vweird.f32 %v842_v57  ;;  %v867_v16 = vand.u32 2147483647, %v842_v57 }
 0x2de   : > { %v855_v8 = vor.u32 1.1754944e-38, %v854_v37  ;;  %vm853_vm10 = vcmp.eq.f32.partialorder %v852_v34, 8.507059e+37 }
 0x2df   : > { %v870_v18 = vor.u32 1.1754944e-38, %v869_v12  ;;  %vm868_vm14 = vcmp.eq.f32.partialorder %v867_v16, 8.507059e+37 }
 0x2e2   : > { %v1437_v60 = vpop.eup %1436 }
 0x2e3   : > { %v1439_v45 = vpop.eup %1438  ;;  %v844_v35 = vmul.f32 %v1437_v60, %v841_v54  ;;  %vm849_vm6 = vweird.f32 %v1437_v60 }
 0x2e4   : > { %v859_v19 = vmul.f32 %v1439_v45, %v842_v57  ;;  %vm850_vm9 = vmor %vm848_vm8, %vm849_vm6  ;;  %vm864_vm11 = vweird.f32 %v1439_v45  ;;  %v1484_v57 = vmov 3   ;;  %vm1956_vm6 = vcmask 293888  }
 0x2e5   : > { %v845_v23 = vsub.f32 1.0, %v844_v35  ;;  %vm865_vm13 = vmor %vm863_vm12, %vm864_vm11  ;;  %1412 = vset.pattern.permute.xlu2 %v1484_v57 }
 0x2e6   : > { %v860_v0 = vsub.f32 1.0, %v859_v19  ;;  %vm1957_vm8 = vmmov %vm1956_vm6 }
 0x2e7   : > { %v846_v25 = vmul.f32 %v1437_v60, %v845_v23 }
 0x2e8   : > { %v861_v1 = vmul.f32 %v1439_v45, %v860_v0 }
 0x2e9   : > { %v847_v3 = vadd.f32 %v1437_v60, %v846_v25 }
 0x2ea   : > { %v862_v10 = vadd.f32 %v1439_v45, %v861_v1 }
 0x2eb   : > { %v851_v9 = vsel %vm850_vm9, %v1437_v60, %v847_v3 }
 0x2ec   : > { %v856_v11 = vsel %vm853_vm10, %v855_v8, %v851_v9  ;;  %v866_v17 = vsel %vm865_vm13, %v1439_v45, %v862_v10 }
 0x2ed   : > { %v1790_v15 = vmul.f32 %v856_v11, %v813_v43  ;;  %v871_v22 = vsel %vm868_vm14, %v870_v18, %v866_v17  ;;  %v1483_v43 = vmov 4  }
 0x2ee   : > { %v874_v24 = vmul.f32 %v871_v22, %v833_v53  ;;  %1413 = vset.pattern.permute.xlu0 %v1483_v43 }
 0x2ef   : > { %923 = vrot.lane.b32.xlu2 %v1790_v15, %s1475_s18  ;;  %956 = vrot.lane.b32.xlu0 %v1790_v15, %s1478_s21  ;;  %v921_v46 = vmul.f32 %v1790_v15, %v441_v29 }
 0x2f0   : > { %945 = vrot.lane.b32.xlu1 %v1790_v15, %s1477_s20 }
 0x2f7   : > { %947 = vrot.lane.b32.xlu2 %v874_v24, %s1477_s20  ;;  %891 = vrot.lane.b32.xlu0 %v1790_v15, %s1472_s15 }
 0x2f8   : > { %934 = vrot.lane.b32.xlu1 %v1790_v15, %s1476_s19 }
 0x2ff   : > { %936 = vrot.lane.b32.xlu2 %v874_v24, %s1476_s19  ;;  %925 = vrot.lane.b32.xlu0 %v874_v24, %s1475_s18 }
 0x300   : > { %913 = vrot.lane.b32.xlu1 %v1790_v15, %s1474_s17 }
 0x307   : > { %888 = vrot.lane.b32.xlu2 %v874_v24, %s1472_s15  ;;  %910 = vrot.lane.b32.xlu0 %v874_v24, %s1474_s17 }
 0x308   : > { %958 = vrot.lane.b32.xlu1 %v874_v24, %s1478_s21  ;;  %s1386_s21 = sshll.u32 %s1963_s10, 4 }
 0x309   : > { %s332_s11 = scalar_lea.vmem %s1945_s9, %s1386_s21 }
 0x30f   : > { %902 = vrot.lane.b32.xlu2 %v1790_v15, %s1473_s16  ;;  %876 = vrot.lane.b32.xlu0 %v874_v24, %s1479_s22 }
 0x310   : > { %899 = vrot.lane.b32.xlu1 %v874_v24, %s1473_s16 }
 0x317   : > { %1097 = vperm.xlu0 %1413, %v1766_v51   ;;  %1001 = vperm.xlu2 %1412, %v1766_v51  }
 0x318   : > { %880 = vrot.lane.b32.xlu1 %v1790_v15, %s1479_s22 }
 0x349   : > { %v924_v40 = vpop.permute.xlu2 %923 }
 0x351   : > { %v948_v38 = vpop.permute.xlu2 %947 }
 0x359   : > { %v937_v47 = vpop.permute.xlu2 %936 }
 0x361   : > { %v957_v50 = vpop.permute.xlu0 %956  ;;  %v889_v37 = vpop.permute.xlu2 %888 }
 0x362   : > { %v946_v53 = vpop.permute.xlu1 %945 }
 0x363   : > { %v949_v45 = vsel %vm509_vm5, %v946_v53, %v948_v38  ;;  %v953_v35 = vsel %vm509_vm5, %v948_v38, %v946_v53  ;;  %vm1954_vm5 = vcmask 138240  }
 0x364   : > { %v954_v0 = vmul.f32 %v949_v45, %v522_v7  ;;  %v955_v25 = vmul.f32 %v953_v35, %v523_v63  ;;  %vm1955_vm15 = vmmov %vm1954_vm5  ;;  %v1120_v45 = vpop.f32.mrf.mxu2 }
 0x366   : > { %v987_v11 = vrot.slane %v954_v0, 4  ;;  %v988_v12 = vrot.slane %v955_v25, 4 }
 0x369   : > { %v892_v44 = vpop.permute.xlu0 %891 }
 0x36a   : > { %v935_v41 = vpop.permute.xlu1 %934 }
 0x36b   : > { %v938_v34 = vsel %vm483_vm4, %v935_v41, %v937_v47  ;;  %v942_v1 = vsel %vm483_vm4, %v937_v47, %v935_v41 }
 0x36c   : > { %v943_v10 = vmul.f32 %v938_v34, %v496_v33  ;;  %v944_v7 = vmul.f32 %v942_v1, %v497_v2 }
 0x36e   : > { %v997_v61 = vsel %vm446_vm0, %v943_v10, %v987_v11  ;;  %v998_v2 = vsel %vm446_vm0, %v944_v7, %v988_v12  ;;  %v1485_v12 = vmov 5  }
 0x36f   : > { %1414 = vset.pattern.permute.xlu1 %v1485_v12  ;;  %1415 = vset.pattern.permute.xlu0 %v1485_v12 }
 0x370   : > { %1193 = vperm.xlu1 %1414, %v1636_v48  }
 0x371   : > { %v926_v54 = vpop.permute.xlu0 %925 }
 0x372   : > { %v914_v60 = vpop.permute.xlu1 %913  ;;  %v927_v19 = vsel %vm457_vm2, %v924_v40, %v926_v54  ;;  %v931_v23 = vsel %vm457_vm2, %v926_v54, %v924_v40  ;;  %v903_v40 = vpop.permute.xlu2 %902 }
 0x373   : > { %v932_v51 = vmul.f32 %v927_v19, %v470_v13  ;;  %v933_v3 = vmul.f32 %v931_v23, %v471_v58 }
 0x375   : > { %v981_v58 = vrot.slane %v932_v51, 4  ;;  %v982_v16 = vrot.slane %v933_v3, 4 }
 0x377   : > { %v995_v32 = vsel %vm446_vm0, %v921_v46, %v981_v58 }
 0x379   : > { %v911_v8 = vpop.permute.xlu0 %910 }
 0x37a   : > { %v959_v9 = vpop.permute.xlu1 %958  ;;  %v915_v17 = vsel %vm424_vm3, %v914_v60, %v911_v8  ;;  %v918_v33 = vsel %vm424_vm3, %v911_v8, %v914_v60  ;;  %vm1952_vm3 = vcmask 130048   ;;  %v1002_v1 = vpop.permute.xlu2 %1001 }
 0x37b   : > { %v960_v56 = vsel %vm535_vm1, %v957_v50, %v959_v9  ;;  %v964_v63 = vsel %vm535_vm1, %v959_v9, %v957_v50  ;;  %v920_v18 = vmul.f32 %v915_v17, %v433_v62  ;;  %vm1950_vm1 = vcmask 121856   ;;  %vm1953_vm4 = vmmov %vm1952_vm3 }
 0x37c   : > { %v965_v13 = vmul.f32 %v960_v56, %v548_v31  ;;  %v966_v52 = vmul.f32 %v964_v63, %v549_v49  ;;  %v922_v31 = vmul.f32 %v874_v24, %v442_v27  ;;  %v919_v49 = vmul.f32 %v918_v33, %v432_v20  ;;  %vm1951_vm2 = vmmov %vm1950_vm1 }
 0x37d   : > { %v976_v15 = vrot.slane %v920_v18, 4  ;;  %v893_v20 = vsel %vm1952_vm3, %v892_v44, %v889_v37  ;;  %v896_v24 = vsel %vm1953_vm4, %v889_v37, %v892_v44 }
 0x37e   : > { %1369 = vmatpush.msk.msrb.mxu0 %vm446_vm0, %v965_v13  ;;  %1371 = vmatpush.msk.msrb.mxu1 %vm446_vm0, %v966_v52  ;;  %v996_v22 = vsel %vm446_vm0, %v922_v31, %v982_v16  ;;  %v975_v29 = vrot.slane %v919_v49, 4  ;;  %v897_v38 = vmul.f32 %v896_v24, %v380_v36  ;;  %v898_v41 = vmul.f32 %v893_v20, %v381_v39  ;;  %v999_v36 = vld [vmem:[%s1941_s5] sm:$0xf] }
 0x380   : > { %1025 = vmatpush.msrb.mxu0 %v997_v61  ;;  %1045 = vmatpush.msrb.mxu1 %v998_v2  ;;  %v969_v54 = vrot.slane %v897_v38, 4  ;;  %v970_v44 = vrot.slane %v898_v41, 4 }
 0x382   : > { %1046 = vmatpush.msrb.mxu1 %v996_v22  ;;  %v900_v43 = vpop.permute.xlu1 %899  ;;  %1026 = vmatpush.msrb.mxu0 %v995_v32 }
 0x383   : > { %v904_v26 = vsel %vm1950_vm1, %v903_v40, %v900_v43  ;;  %v907_v27 = vsel %vm1951_vm2, %v900_v43, %v903_v40 }
 0x384   : > { %v908_v55 = vmul.f32 %v907_v27, %v406_v42  ;;  %v909_v62 = vmul.f32 %v904_v26, %v407_v5  ;;  %v877_v42 = vpop.permute.xlu0 %876 }
 0x386   : > { %v993_v50 = vsel %vm446_vm0, %v908_v55, %v975_v29  ;;  %v994_v53 = vsel %vm446_vm0, %v909_v62, %v976_v15 }
 0x387   : > { %1027 = vmatpush.msrb.mxu0 %v993_v50  ;;  %1047 = vmatpush.msrb.mxu1 %v994_v53 }
 0x38a   : > { %v881_v47 = vpop.permute.xlu1 %880 }
 0x38b   : > { %v882_v59 = vsel %vm1954_vm5, %v881_v47, %v877_v42  ;;  %v885_v5 = vsel %vm1955_vm15, %v877_v42, %v881_v47 }
 0x38c   : > { %v886_v57 = vmul.f32 %v885_v5, %v354_v4  ;;  %v887_v60 = vmul.f32 %v882_v59, %v355_v6  ;;  %v1098_v35 = vpop.permute.xlu0 %1097  ;;  %v1140_v4 = vpop.f32.mrf.mxu3 }
 0x38d   : > { %v1891_v19 = vadd.f32 %v1120_v45, %v1098_v35  ;;  %v1893_v28 = vadd.f32 %v1140_v4, %v1098_v35 }
 0x38e   : > { %v991_v14 = vsel %vm446_vm0, %v886_v57, %v969_v54  ;;  %v992_v39 = vsel %vm446_vm0, %v887_v60, %v970_v44 }
 0x38f   : > { %1028 = vmatpush.msrb.mxu0 %v991_v14  ;;  %1048 = vmatpush.msrb.mxu1 %v992_v39  ;;  %v1377_v6 = vmul.f32 -1.442695, %v1891_v19  ;;  %v1378_v23 = vmul.f32 -1.442695, %v1893_v28 }
 0x390   : > { %1370 = vmatmul.msk.f32.vlgmr.msrb.gmra.mxu0 %vm1956_vm6, %v999_v36  ;;  %1372 = vmatmul.msk.f32.vlgmr.msrb.gmra.mxu1 %vm1957_vm8, %v999_v36 }
 0x391   : > { %1440 = vpow2.f32 %v1377_v6 }
 0x392   : > { %1442 = vpow2.f32 %v1378_v23 }
 0x397   : > { %v1441_v37 = vpop.eup %1440 }
 0x398   : > { %v1443_v0 = vpop.eup %1442  ;;  %v1149_v25 = vadd.f32 1.0, %v1441_v37 }
 0x399   : > { %v1150_v34 = vadd.f32 1.0, %v1443_v0 }
 0x39a   : > { %1444 = vrcp.f32 %v1149_v25  ;;  %vm1156_vm9 = vweird.f32 %v1149_v25  ;;  %v1162_v46 = vand.u32 2147483648, %v1149_v25  ;;  %v1160_v18 = vand.u32 2147483647, %v1149_v25 }
 0x39b   : > { %1446 = vrcp.f32 %v1150_v34  ;;  %vm1171_vm11 = vweird.f32 %v1150_v34  ;;  %v1177_v22 = vand.u32 2147483648, %v1150_v34  ;;  %v1175_v43 = vand.u32 2147483647, %v1150_v34 }
 0x39c   : > { %v1163_v15 = vor.u32 1.1754944e-38, %v1162_v46  ;;  %vm1161_vm1 = vcmp.eq.f32.partialorder %v1160_v18, 8.507059e+37 }
 0x39d   : > { %v1178_v20 = vor.u32 1.1754944e-38, %v1177_v22  ;;  %vm1176_vm2 = vcmp.eq.f32.partialorder %v1175_v43, 8.507059e+37 }
 0x3a0   : > { %v1445_v56 = vpop.eup %1444 }
 0x3a1   : > { %v1447_v63 = vpop.eup %1446  ;;  %v1152_v11 = vmul.f32 %v1445_v56, %v1149_v25  ;;  %vm1157_vm10 = vweird.f32 %v1445_v56 }
 0x3a2   : > { %v1167_v13 = vmul.f32 %v1447_v63, %v1150_v34  ;;  %vm1172_vm12 = vweird.f32 %v1447_v63  ;;  %vm1904_vm13 = vmor %vm1156_vm9, %vm1157_vm10 }
 0x3a3   : > { %v1153_v58 = vsub.f32 1.0, %v1152_v11  ;;  %vm1908_vm14 = vmor %vm1171_vm11, %vm1172_vm12 }
 0x3a4   : > { %v1168_v17 = vsub.f32 1.0, %v1167_v13 }
 0x3a5   : > { %v1154_v2 = vmul.f32 %v1445_v56, %v1153_v58 }
 0x3a6   : > { %v1169_v31 = vmul.f32 %v1447_v63, %v1168_v17 }
 0x3a7   : > { %v1155_v49 = vadd.f32 %v1445_v56, %v1154_v2 }
 0x3a8   : > { %v1170_v40 = vadd.f32 %v1447_v63, %v1169_v31 }
 0x3a9   : > { %v1159_v62 = vsel %vm1904_vm13, %v1445_v56, %v1155_v49 }
 0x3aa   : > { %v1174_v50 = vsel %vm1908_vm14, %v1447_v63, %v1170_v40  ;;  %v1164_v59 = vsel %vm1161_vm1, %v1163_v15, %v1159_v62 }
 0x3ab   : > { %v1179_v44 = vsel %vm1176_vm2, %v1178_v20, %v1174_v50  ;;  %v1181_v14 = vmul.f32 %v1164_v59, %v1891_v19 }
 0x3ac   : > { %v1182_v35 = vmul.f32 %v1179_v44, %v1893_v28 }
 0x3ad   : > { %v1185_v25 = vrot.slane %v1181_v14, 4 }
 0x40d   : > { %v1030_v51 = vpop.f32.mrf.mxu0  ;;  %v1050_v3 = vpop.f32.mrf.mxu1 }
 0x40e   : > { %v1897_v8 = vadd.f32 %v1030_v51, %v1002_v1  ;;  %v1899_v9 = vadd.f32 %v1050_v3, %v1002_v1  ;;  %v1186_v1 = vrot.slane %v1182_v35, 4  ;;  %v1191_v51 = vld [vmem:[%s1943_s7] sm:$0xff] }
 0x410   : > { %v1373_v10 = vmul.f32 -1.442695, %v1897_v8  ;;  %v1374_v7 = vmul.f32 -1.442695, %v1899_v9 }
 0x412   : > { %1448 = vpow2.f32 %v1373_v10 }
 0x413   : > { %1450 = vpow2.f32 %v1374_v7 }
 0x418   : > { %v1449_v52 = vpop.eup %1448 }
 0x419   : > { %v1451_v16 = vpop.eup %1450  ;;  %v1059_v33 = vadd.f32 1.0, %v1449_v52 }
 0x41a   : > { %v1060_v61 = vadd.f32 1.0, %v1451_v16 }
 0x41b   : > { %1452 = vrcp.f32 %v1059_v33  ;;  %v1072_v53 = vand.u32 2147483648, %v1059_v33  ;;  %v1070_v42 = vand.u32 2147483647, %v1059_v33  ;;  %vm1066_vm5 = vweird.f32 %v1059_v33 }
 0x41c   : > { %1454 = vrcp.f32 %v1060_v61  ;;  %v1087_v47 = vand.u32 2147483648, %v1060_v61  ;;  %v1085_v54 = vand.u32 2147483647, %v1060_v61  ;;  %vm1081_vm6 = vweird.f32 %v1060_v61 }
 0x41d   : > { %v1073_v60 = vor.u32 1.1754944e-38, %v1072_v53  ;;  %vm1071_vm8 = vcmp.eq.f32.partialorder %v1070_v42, 8.507059e+37 }
 0x41e   : > { %v1088_v45 = vor.u32 1.1754944e-38, %v1087_v47  ;;  %vm1086_vm10 = vcmp.eq.f32.partialorder %v1085_v54, 8.507059e+37 }
 0x421   : > { %v1453_v32 = vpop.eup %1452 }
 0x422   : > { %v1455_v26 = vpop.eup %1454  ;;  %v1062_v29 = vmul.f32 %v1453_v32, %v1059_v33  ;;  %vm1067_vm3 = vweird.f32 %v1453_v32 }
 0x423   : > { %v1077_v55 = vmul.f32 %v1455_v26, %v1060_v61  ;;  %vm1082_vm4 = vweird.f32 %v1455_v26  ;;  %vm1068_vm15 = vmor %vm1066_vm5, %vm1067_vm3 }
 0x424   : > { %v1063_v24 = vsub.f32 1.0, %v1062_v29  ;;  %vm1083_vm9 = vmor %vm1081_vm6, %vm1082_vm4 }
 0x425   : > { %v1078_v38 = vsub.f32 1.0, %v1077_v55 }
 0x426   : > { %v1064_v41 = vmul.f32 %v1453_v32, %v1063_v24 }
 0x427   : > { %v1079_v5 = vmul.f32 %v1455_v26, %v1078_v38 }
 0x428   : > { %v1065_v57 = vadd.f32 %v1453_v32, %v1064_v41 }
 0x429   : > { %v1080_v36 = vadd.f32 %v1455_v26, %v1079_v5 }
 0x42a   : > { %v1069_v39 = vsel %vm1068_vm15, %v1453_v32, %v1065_v57 }
 0x42b   : > { %v1074_v4 = vsel %vm1071_vm8, %v1073_v60, %v1069_v39  ;;  %v1084_v6 = vsel %vm1083_vm9, %v1455_v26, %v1080_v36 }
 0x42c   : > { %v1091_v23 = vmul.f32 %v1074_v4, %v1897_v8  ;;  %v1089_v37 = vsel %vm1086_vm10, %v1088_v45, %v1084_v6  ;;  %v1194_v8 = vpop.permute.xlu1 %1193 }
 0x42d   : > { %v1092_v0 = vmul.f32 %v1089_v37, %v1899_v9 }
 0x42e   : > { %v1093_v34 = vadd.f32 %v1091_v23, %v1778_v21 }
 0x42f   : > { %v1094_v19 = vadd.f32 %v1092_v0, %v1783_v30 }
 0x430   : > { %v1189_v28 = vsel %vm446_vm0, %v1093_v34, %v1185_v25 }
 0x431   : > { %1214 = vmatpush.msrb.mxu2 %v1189_v28  ;;  %v1190_v3 = vsel %vm446_vm0, %v1094_v19, %v1186_v1 }
 0x432   : > { %1234 = vmatpush.msrb.mxu3 %v1190_v3  ;;  %1379 = vmatmul.msk.f32.vlgmr.msrb.gmra.mxu2 %vm696_vm7, %v1191_v51 }
 0x433   : > { %1380 = vmatmul.msk.f32.vlgmr.msrb.gmra.mxu3 %vm696_vm7, %v1191_v51 }
 0x4b5   : > { %v1216_v9 = vpop.f32.mrf.mxu2 }
 0x4b6   : > { %v1236_v21 = vpop.f32.mrf.mxu3  ;;  %v1217_v10 = vadd.f32 %v1216_v9, %v1194_v8 }
 0x4b7   : > { %v1237_v7 = vadd.f32 %v1236_v21, %v1194_v8 }
 0x4b8   : > { %v1381_v30 = vmul.f32 -1.442695, %v1217_v10 }
 0x4b9   : > { %v1382_v56 = vmul.f32 -1.442695, %v1237_v7 }
 0x4ba   : > { %1456 = vpow2.f32 %v1381_v30 }
 0x4bb   : > { %1458 = vpow2.f32 %v1382_v56 }
 0x4c0   : > { %v1457_v63 = vpop.eup %1456 }
 0x4c1   : > { %v1459_v11 = vpop.eup %1458  ;;  %v1245_v12 = vadd.f32 1.0, %v1457_v63 }
 0x4c2   : > { %v1246_v13 = vadd.f32 1.0, %v1459_v11 }
 0x4c3   : > { %1460 = vrcp.f32 %v1245_v12  ;;  %v1258_v2 = vand.u32 2147483648, %v1245_v12  ;;  %v1256_v49 = vand.u32 2147483647, %v1245_v12  ;;  %vm1252_vm11 = vweird.f32 %v1245_v12 }
 0x4c4   : > { %1462 = vrcp.f32 %v1246_v13  ;;  %v1273_v31 = vand.u32 2147483648, %v1246_v13  ;;  %v1271_v22 = vand.u32 2147483647, %v1246_v13  ;;  %vm1267_vm12 = vweird.f32 %v1246_v13 }
 0x4c5   : > { %v1259_v40 = vor.u32 1.1754944e-38, %v1258_v2  ;;  %vm1257_vm1 = vcmp.eq.f32.partialorder %v1256_v49, 8.507059e+37 }
 0x4c6   : > { %v1274_v43 = vor.u32 1.1754944e-38, %v1273_v31  ;;  %vm1272_vm2 = vcmp.eq.f32.partialorder %v1271_v22, 8.507059e+37 }
 0x4c9   : > { %v1461_v52 = vpop.eup %1460 }
 0x4ca   : > { %v1463_v58 = vpop.eup %1462  ;;  %v1248_v16 = vmul.f32 %v1461_v52, %v1245_v12  ;;  %vm1253_vm0 = vweird.f32 %v1461_v52 }
 0x4cb   : > { %v1263_v17 = vmul.f32 %v1463_v58, %v1246_v13  ;;  %vm1268_vm7 = vweird.f32 %v1463_v58  ;;  %vm1254_vm13 = vmor %vm1252_vm11, %vm1253_vm0 }
 0x4cc   : > { %v1249_v33 = vsub.f32 1.0, %v1248_v16  ;;  %vm1269_vm14 = vmor %vm1267_vm12, %vm1268_vm7 }
 0x4cd   : > { %v1264_v61 = vsub.f32 1.0, %v1263_v17 }
 0x4ce   : > { %v1250_v46 = vmul.f32 %v1461_v52, %v1249_v33 }
 0x4cf   : > { %v1265_v18 = vmul.f32 %v1463_v58, %v1264_v61 }
 0x4d0   : > { %v1251_v32 = vadd.f32 %v1461_v52, %v1250_v46 }
 0x4d1   : > { %v1266_v48 = vadd.f32 %v1463_v58, %v1265_v18 }
 0x4d2   : > { %v1255_v26 = vsel %vm1254_vm13, %v1461_v52, %v1251_v32 }
 0x4d3   : > { %v1270_v27 = vsel %vm1269_vm14, %v1463_v58, %v1266_v48  ;;  %v1260_v29 = vsel %vm1257_vm1, %v1259_v40, %v1255_v26 }
 0x4d4   : > { %v1275_v15 = vsel %vm1272_vm2, %v1274_v43, %v1270_v27  ;;  %v1277_v55 = vmul.f32 %v1260_v29, %v1217_v10 }
 0x4d5   : > { %v1278_v62 = vmul.f32 %v1275_v15, %v1237_v7 }
 0x4d6   : > { %1279 = vst [vmem:[%s332_s11] sm:$0xff] %v1277_v55 }
 0x4d7   : > { %1280 = vst [vmem:[%s332_s11 + $0x8] sm:$0xff] %v1278_v62 }
 0x4d8 PF: > { %s19_s30 = sadd.s32 1, %s1470_s30  }
 0x4d9   : > { %p16_p4 = scmp.ge.s32.totalorder %s19_s30, 4  }
 0x4db   :  { %18 = sbr.rel (!%p16_p4) target bundleno = 1 (0x1), region = 94 }

</bundles_post_ra>
